<compile_context>
chip_gen: v7x
topology: tpu7x:2x2x1
jax: 0.10.0
libtpu: 0.0.40
codegen_flags: <defaults>
</compile_context>

<pallas_src>
import functools

import jax
import jax.numpy as jnp
from jax.experimental import pallas as pl
from jax.experimental.pallas import tpu as pltpu


# ------------------------------- kernel -------------------------------------


def _moving_average_kernel(x_ref, o_ref, *, L, C, k, pad):
    # x_ref: (Bblk, L*C)  flattened (seq, channel), channels contiguous on lanes
    # o_ref: (Bblk, Lout1*C) with Lout1 = L + 2*pad - k + 1  (stride-1 result)
    x = x_ref[...]                                   # (Bblk, L*C)
    front = x[:, :C]                                 # first time step (all channels)
    end = x[:, (L - 1) * C:]                         # last time step  (all channels)
    if pad > 0:
        xp = jnp.concatenate([front] * pad + [x] + [end] * pad, axis=1)
    else:
        xp = x                                       # (Bblk, (L + 2*pad)*C)

    lout1 = L + 2 * pad - k + 1
    width = lout1 * C
    # k-tap window sum = sum of k lane-shifted slices (shift step = C lanes).
    acc = xp[:, 0:width].astype(jnp.float32)
    for j in range(1, k):                            # k is a static Python int
        acc = acc + xp[:, j * C: j * C + width].astype(jnp.float32)
    o_ref[...] = (acc * (1.0 / k)).astype(o_ref.dtype)


# ------------------------------- wrapper ------------------------------------


def _pick_batch_block(B, row_bytes, budget_bytes=4 << 20):
    """Whole batch if it fits a modest VMEM budget, else the largest multiple
    of 8 dividing B that fits (block sublane dim must be full B or 8-aligned)."""
    if B * row_bytes <= budget_bytes:
        return B
    best = None
    for d in range(8, B + 1, 8):
        if B % d == 0 and d * row_bytes <= budget_bytes:
            best = d
    return best if best is not None else B


def moving_average(x, kernel_size, stride=1):
    """x: (B, L, C) -> (B, Lout, C), Lout = (L + 2*pad - k)//stride + 1."""
    B, L, C = x.shape
    k = int(kernel_size)
    s = int(stride)
    pad = (k - 1) // 2
    lout1 = L + 2 * pad - k + 1                      # stride-1 output length
    assert lout1 >= 1, "kernel_size too large for this sequence length"

    x2 = x.reshape(B, L * C)                         # free, row-major contiguous
    bb = _pick_batch_block(B, (L + 2 * pad) * C * x.dtype.itemsize)

    kernel = functools.partial(_moving_average_kernel, L=L, C=C, k=k, pad=pad)
    out2 = pl.pallas_call(
        kernel,
        out_shape=jax.ShapeDtypeStruct((B, lout1 * C), x.dtype),
        grid_spec=pltpu.PrefetchScalarGridSpec(
            num_scalar_prefetch=0,
            grid=(B // bb,),
            in_specs=[pl.BlockSpec((bb, L * C), lambda i: (i, 0))],
            out_specs=pl.BlockSpec((bb, lout1 * C), lambda i: (i, 0)),
        ),
        compiler_params=pltpu.CompilerParams(
            dimension_semantics=("parallel",),
        ),
    )(x2)

    out = out2.reshape(B, lout1, C)                  # free reshape
    if s > 1:
        out = out[:, ::s, :]                         # AvgPool stride = subsample
    return out


# ------------------------------ reference -----------------------------------


def moving_average_ref(x, kernel_size, stride=1):
    k = int(kernel_size)
    s = int(stride)
    pad = (k - 1) // 2
    front = jnp.repeat(x[:, :1, :], pad, axis=1)
    end = jnp.repeat(x[:, -1:, :], pad, axis=1)
    xp = jnp.concatenate([front, x, end], axis=1)
    Lp = xp.shape[1]
    lout = (Lp - k) // s + 1
    windows = [xp[:, t * s: t * s + k, :].mean(axis=1) for t in range(lout)]
    return jnp.stack(windows, axis=1)


# -------------------------------- main --------------------------------------

if __name__ == "__main__":
    key = jax.random.PRNGKey(0)
    B, L, C = 2, 16, 4
    x = jax.random.normal(key, (B, L, C), dtype=jnp.float32)

    # Typical decomposition setting: odd kernel, stride 1 (Lout == L).
    out = jax.block_until_ready(moving_average(x, kernel_size=5, stride=1))
    ref = moving_average_ref(x, kernel_size=5, stride=1)
    assert out.shape == ref.shape == (B, L, C)
    assert jnp.allclose(out, ref, atol=1e-5, rtol=1e-5)

    # General case: even kernel, stride 2.
    out2 = jax.block_until_ready(moving_average(x, kernel_size=4, stride=2))
    ref2 = moving_average_ref(x, kernel_size=4, stride=2)
    assert out2.shape == ref2.shape
    assert jnp.allclose(out2, ref2, atol=1e-5, rtol=1e-5)

    print("KERNEL_OK")
</pallas_src>

<mosaic_0001>
module attributes {stable_mosaic.version = 11 : i64} {
  func.func @_moving_average_kernel(%arg0: i32, %arg1: memref<2x64xf32, #tpu.memory_space<vmem>>, %arg2: memref<2x64xf32, #tpu.memory_space<vmem>>) attributes {dimension_semantics = [#tpu.dimension_semantics<parallel>], iteration_bounds = array<i64: 1>, scalar_prefetch = 0 : i64, scratch_operands = 0 : i64, tpu.core_type = #tpu.core_type<tc>, window_params = [{transform_indices = @transform_0, window_bounds = array<i64: 2, 64>}, {transform_indices = @transform_1, window_bounds = array<i64: 2, 64>}]} {
    %c0 = arith.constant 0 : index
    %c0_0 = arith.constant 0 : index
    %0 = vector.load %arg1[%c0, %c0_0] : memref<2x64xf32, #tpu.memory_space<vmem>>, vector<2x64xf32>
    %1 = vector.extract_strided_slice %0 {offsets = [0, 0], sizes = [2, 4], strides = [1, 1]} : vector<2x64xf32> to vector<2x4xf32>
    %2 = vector.extract_strided_slice %0 {offsets = [0, 60], sizes = [2, 4], strides = [1, 1]} : vector<2x64xf32> to vector<2x4xf32>
    %3 = tpu.concatenate %1, %1, %0, %2, %2 in 1 : vector<2x4xf32>, vector<2x4xf32>, vector<2x64xf32>, vector<2x4xf32>, vector<2x4xf32> -> vector<2x80xf32>
    %4 = vector.extract_strided_slice %3 {offsets = [0, 0], sizes = [2, 64], strides = [1, 1]} : vector<2x80xf32> to vector<2x64xf32>
    %5 = vector.extract_strided_slice %3 {offsets = [0, 4], sizes = [2, 64], strides = [1, 1]} : vector<2x80xf32> to vector<2x64xf32>
    %6 = arith.addf %4, %5 : vector<2x64xf32>
    %7 = vector.extract_strided_slice %3 {offsets = [0, 8], sizes = [2, 64], strides = [1, 1]} : vector<2x80xf32> to vector<2x64xf32>
    %8 = arith.addf %6, %7 : vector<2x64xf32>
    %9 = vector.extract_strided_slice %3 {offsets = [0, 12], sizes = [2, 64], strides = [1, 1]} : vector<2x80xf32> to vector<2x64xf32>
    %10 = arith.addf %8, %9 : vector<2x64xf32>
    %11 = vector.extract_strided_slice %3 {offsets = [0, 16], sizes = [2, 64], strides = [1, 1]} : vector<2x80xf32> to vector<2x64xf32>
    %12 = arith.addf %10, %11 : vector<2x64xf32>
    %cst = arith.constant 2.000000e-01 : f32
    %13 = vector.broadcast %cst : f32 to vector<2x64xf32>
    %14 = arith.mulf %12, %13 : vector<2x64xf32>
    %c0_1 = arith.constant 0 : index
    %c0_2 = arith.constant 0 : index
    %15 = vector.load %arg2[%c0_1, %c0_2] : memref<2x64xf32, #tpu.memory_space<vmem>>, vector<2x64xf32>
    tpu.vector_store %arg2[%c0_1, %c0_2], %14 {strides = array<i32>} : memref<2x64xf32, #tpu.memory_space<vmem>>, vector<2x64xf32>,
    return
  }
  func.func @transform_0(%arg0: i32) -> (i32, i32) {
    %c0_i32 = arith.constant 0 : i32
    %c0_i32_0 = arith.constant 0 : i32
    return %arg0, %c0_i32 : i32, i32
  }
  func.func @transform_1(%arg0: i32) -> (i32, i32) {
    %c0_i32 = arith.constant 0 : i32
    %c0_i32_0 = arith.constant 0 : i32
    return %arg0, %c0_i32 : i32, i32
  }
}

</mosaic_0001>

<bundles_post_ra>
// kernel: tpu_custom_call.1
= control target key start
LH: loop header
LB: loop body
LE: loop exit
PB: predicated region body
PF: predicated region fallthrough
CT: control target
= control target key end

     0   :  { %6 = vsyncpa [#allocation3], 0  ;;  %s180_s0 = inlined_call_operand.hbm [shape: f32[2,64], index: 0, kind: input, shape index: {}]   ;;  %s181_s1 = inlined_call_operand.hbm [shape: f32[2,64], index: 1, kind: output, shape index: {}]  }
   0x1   :  { %7 = vsyncpa [#allocation4], 0  ;;  %s136_s6 = smov [#allocation2]   ;;  %s88_s10 = scalar_lea.hbm %s180_s0, 32 }
   0x2   :  { %s14_s7 = sshll.u32 %s136_s6, 4  ;;  %p89_p0 = scmp.ne.s32.totalorder %s180_s0, %s88_s10  ;;  %s15_s7 = int_to_ptr.vmem [resolvable:$true] %s14_s7 }
   0x3   :  { %p92_p1 = scmp.lt.u32.totalorder %s88_s10, %s180_s0 }
   0x5   :  { %p94_p2 = pnand %p92_p1, %p89_p0 }
   0x7   :  { %97 = shalt.err (!%p94_p2)
}
   0x8   :  { %s98_s15 = scalar_lea.vmem %s15_s7, 32  ;;  %p103_p4 = scmp.lt.s32.totalorder %s15_s7, %s15_s7 }
   0x9   :  { %p99_p3 = scmp.ne.s32.totalorder %s15_s7, %s98_s15  ;;  %p104_p5 = scmp.lt.s32.totalorder %s98_s15, %s98_s15 }
   0xb   :  { %p105_p6 = por %p104_p5, %p103_p4 }
   0xd   :  { %p106_p7 = pnand %p105_p6, %p99_p3 }
   0xf   :  { %109 = shalt.err (!%p106_p7)
}
  0x10   :  { %17 = dma.hbm_to_vmem [thread:$0]  %s180_s0, 32, %s15_s7, [#allocation3]  }
  0x11   :  { %132 = dma.done.wait [#allocation3], 32  }
  0x12   :  { %133 = vsyncadd [#allocation3], 4294967264  ;;  %v21_v0 = vld [vmem:[#allocation2] sm:$0x3]  ;;  %s137_s18 = smov 4   ;;  %s138_s19 = smov 12  }
  0x13   :  { %23 = vrot.lane.b32.xlu0 %v21_v0, %s137_s18  ;;  %29 = vrot.lane.b32.xlu1 %v21_v0, %s138_s19  ;;  %s139_s20 = smov 8   ;;  %s140_s21 = smov 16   ;;  %vm35_vm0 = vcmask 31744   ;;  %vm37_vm1 = vcmask 64512   ;;  %vm39_vm2 = vcmask 588800   ;;  %vm41_vm3 = vcmask 621568  }
  0x14   :  { %s141_s0 = smov 120   ;;  %s142_s22 = smov 124   ;;  %vm61_vm4 = vcmask 517120  }
  0x15   :  { %s143_s23 = smov 112   ;;  %s144_s24 = smov 116  }
  0x16   :  { %s145_s25 = smov [#allocation5]  }
  0x17   :  { %26 = vrot.lane.b32.xlu0 %v21_v0, %s139_s20  ;;  %32 = vrot.lane.b32.xlu1 %v21_v0, %s140_s21  ;;  %s69_s26 = sshll.u32 %s145_s25, 4  ;;  %s70_s26 = int_to_ptr.vmem [resolvable:$true] %s69_s26 }
  0x18   :  { %s110_s27 = scalar_lea.vmem %s70_s26, 32  ;;  %p115_p9 = scmp.lt.s32.totalorder %s70_s26, %s70_s26 }
  0x19   :  { %p111_p8 = scmp.ne.s32.totalorder %s70_s26, %s110_s27  ;;  %p116_p10 = scmp.lt.s32.totalorder %s110_s27, %s110_s27 }
  0x1b   :  { %p117_p11 = por %p116_p10, %p115_p9 }
  0x1d   :  { %p118_p12 = pnand %p117_p11, %p111_p8 }
  0x85   :  { %v24_v1 = vpop.permute.xlu0 %23  ;;  %v30_v2 = vpop.permute.xlu1 %29 }
  0x86   :  { %v36_v3 = vsel %vm35_vm0, %v21_v0, %v24_v1 }
  0x89   :  { %v27_v4 = vpop.permute.xlu0 %26  ;;  %v33_v5 = vpop.permute.xlu1 %32 }
  0x8a   :  { %v38_v6 = vsel %vm37_vm1, %v36_v3, %v27_v4 }
  0x8b   :  { %v40_v7 = vsel %vm39_vm2, %v38_v6, %v30_v2 }
  0x8c   :  { %v42_v8 = vsel %vm41_vm3, %v40_v7, %v33_v5 }
  0x8d   :  { %48 = vrot.lane.b32.xlu1 %v42_v8, %s141_s0  ;;  %44 = vrot.lane.b32.xlu0 %v42_v8, %s142_s22 }
  0x91   :  { %56 = vrot.lane.b32.xlu1 %v42_v8, %s143_s23  ;;  %52 = vrot.lane.b32.xlu0 %v42_v8, %s144_s24 }
  0xff   :  { %v49_v9 = vpop.permute.xlu1 %48  ;;  %v45_v10 = vpop.permute.xlu0 %44 }
 0x100   :  { %v47_v11 = vadd.f32 %v45_v10, %v42_v8 }
 0x102   :  { %v51_v12 = vadd.f32 %v49_v9, %v47_v11 }
 0x103   :  { %v53_v13 = vpop.permute.xlu0 %52  ;;  %v57_v15 = vpop.permute.xlu1 %56 }
 0x104   :  { %v55_v14 = vadd.f32 %v53_v13, %v51_v12 }
 0x106   :  { %v59_v16 = vadd.f32 %v57_v15, %v55_v14 }
 0x108   :  { %v60_v17 = vmul.f32 0.2, %v59_v16 }
 0x10a   :  { %62 = vst.msk [vmem:[#allocation5] sm:$0x3] %vm61_vm4, %v60_v17 }
 0x10b   :  { %121 = shalt.err (!%p118_p12)
}
 0x10c   :  { %s122_s30 = scalar_lea.hbm %s181_s1, 32 }
 0x10d   :  { %p123_p13 = scmp.ne.s32.totalorder %s181_s1, %s122_s30  ;;  %p126_p0 = scmp.lt.u32.totalorder %s122_s30, %s181_s1 }
 0x10f   :  { %p128_p1 = pnand %p126_p0, %p123_p13 }
 0x111   :  { %131 = shalt.err (!%p128_p1)
}
 0x112   :  { %72 = dma.vmem_to_hbm [thread:$0]  %s70_s26, 32, %s181_s1, [#allocation4]  }
 0x113   :  { %134 = dma.done.wait [#allocation4], 32  }
 0x114   :  { %135 = vsyncadd [#allocation4], 4294967264 }
 0x115   :  { %76 = vsyncpa [#allocation3], 1 }
 0x116   :  { %77 = vsyncpa [#allocation4], 1 }

</bundles_post_ra>
